<compile_context>
chip_gen: v7x
topology: tpu7x:2x2x1
jax: 0.10.0
libtpu: 0.0.40
codegen_flags: <defaults>
</compile_context>

<pallas_src>
import functools
import math

import jax
import jax.numpy as jnp
import numpy as np
from jax import lax
from jax.experimental import pallas as pl
from jax.experimental.pallas import tpu as pltpu


# --------------------------------------------------------------------------
# Feature probe: stride-0 sublane-broadcast loads (ref[pl.ds(s, n, stride=0)]).
# Verified end-to-end (compile + run + value check); falls back to a jnp
# broadcast of a [1, TH] row if unsupported by the running JAX/Mosaic.
# --------------------------------------------------------------------------
@functools.cache
def _stride0_broadcast_load_ok() -> bool:
    try:
        def probe(x_ref, o_ref):
            o_ref[...] = x_ref[pl.ds(3, 8, stride=0), :]

        x = jnp.broadcast_to(
            lax.broadcasted_iota(jnp.float32, (8, 1), 0), (8, 128))
        y = pl.pallas_call(
            probe, out_shape=jax.ShapeDtypeStruct((8, 128), jnp.float32))(x)
        return bool(jnp.all(y == 3.0))
    except Exception:
        return False


def _vmem_capacity_bytes() -> int:
    try:
        return int(pltpu.get_tpu_info().vmem_capacity_bytes)
    except Exception:
        return 64 << 20          # conservative default (v7x per-core VMEM)


def _pick_time_block(L: int) -> int:
    # Largest output-time tile (multiple of 8 sublanes) that still gives >= 2
    # grid steps along the time axis (parallel work for v7x's two cores).
    # This also sets the effective static unroll of the tap loop (sweepable
    # via the `time_block=` kwarg: 8 / 16 / 32).
    for cand in (32, 16, 8):
        if L % cand == 0 and L // cand >= 2:
            return cand
    return L                     # tiny / odd seq-len fallback: one time block


def _pick_block_h(H: int, L: int, x_bytes: int, to: int, vmem_cap: int) -> int:
    budget = vmem_cap // 2       # leave headroom for compiler scratch etc.
    for cand in (512, 256, 128):
        if H % cand == 0:
            need = 2 * L * cand * (4 + x_bytes) + 2 * to * cand * x_bytes
            if need <= budget:
                return cand
    if H % 128 == 0:
        # TODO(synk): if even block_h=128 overflows VMEM (extreme L), also tile
        # the resident x block along time (manual DMA / emit_pipeline).
        return 128
    return H                     # sub-128-lane fallback (tests / odd H)


# ----------------------------- Pallas kernel -------------------------------
def _build_kernel(L: int, TO: int, block_h: int, use_stride0: bool):
    def k_row(k_ref, s):
        # Filter row s broadcast across the TO output rows.
        if use_stride0:
            # stride-0 vld: the broadcast happens in the (under-used) load slot.
            return k_ref[pl.ds(s, TO, stride=0), :]
        return jnp.broadcast_to(k_ref[pl.ds(s, 1), :], (TO, block_h))

    def kernel(k_ref, x_ref, o_ref):
        # k_ref : [L, block_h]   implicit filter tile (f32), VMEM-resident
        # x_ref : [L, block_h]   full-sequence input tile (batch squeezed)
        # o_ref : [TO, block_h]  output time block
        i = pl.program_id(2)                         # output time-block index
        t0 = pl.multiple_of(i * TO, TO)              # first output row

        # Residual + tap 0:  acc[r] = x[t0+r] * (1 + k[0]);  stays in vregs.
        acc = x_ref[pl.ds(t0, TO), :] * (k_row(k_ref, 0) + 1.0)

        # Taps 1 .. t0 (windows fully in range): TO taps per fori step, inner
        # loop statically unrolled so slice loads and FMAs co-issue.
        def tap_block(j, acc):
            base = pl.multiple_of((i - j) * TO, TO)  # == t0 - j*TO
            for u in range(1, TO + 1):               # static unroll (= TO)
                xs = x_ref[pl.ds(base - u, TO), :]   # x[t0-s .. t0-s+TO-1]
                acc = acc + xs * k_row(k_ref, j * TO + u)
            return acc

        acc = lax.fori_loop(0, i, tap_block, acc)

        # Boundary taps s = t0+1 .. t0+TO-1: their window dips below t = 0.
        # Handled with an in-vreg carried shift of input block 0 (zero-filled
        # top rows); only TO-1 small rolls per step.
        if TO > 1:
            x0 = x_ref[pl.ds(0, TO), :].astype(jnp.float32)
            not_top = lax.broadcasted_iota(jnp.int32, (TO, block_h), 0) > 0
            shifted = x0
            for d in range(1, TO):                   # static, TO-1 iterations
                shifted = jnp.where(
                    not_top, pltpu.roll(shifted, shift=1, axis=0), 0.0)
                acc = acc + shifted * k_row(k_ref, t0 + d)

        o_ref[...] = acc.astype(o_ref.dtype)

    return kernel


def implicit_long_convolution(x, k, *, block_h=None, time_block=None):
    """x: [B, L, H]; k: [L, H] implicit filter. Returns [B, L, H]."""
    B, L, H = x.shape
    assert k.shape == (L, H)
    k = k.astype(jnp.float32)

    TO = time_block if time_block is not None else _pick_time_block(L)
    assert L % TO == 0
    n_t = L // TO

    x_bytes = x.dtype.itemsize
    vmem_cap = _vmem_capacity_bytes()
    if block_h is None:
        block_h = _pick_block_h(H, L, x_bytes, TO, vmem_cap)
    assert H % block_h == 0
    n_h = H // block_h

    # Double-buffered k + x tiles dominate VMEM; size the scoped limit to them.
    need = 2 * L * block_h * (4 + x_bytes) + 2 * TO * block_h * x_bytes
    vmem_limit = int(min(vmem_cap * 7 // 8, max(32 << 20, 3 * need)))

    cost = pl.CostEstimate(
        flops=int(B * H * L * (L + 1)),              # causal: ~L^2/2 MACs per (b, h)
        transcendentals=0,
        bytes_accessed=int(2 * B * L * H * x_bytes + L * H * 4),
    )

    kernel = _build_kernel(L, TO, block_h, _stride0_broadcast_load_ok())

    return pl.pallas_call(
        kernel,
        out_shape=jax.ShapeDtypeStruct((B, L, H), x.dtype),
        grid=(n_h, B, n_t),
        in_specs=[
            # k: block index depends only on h (outermost) -> stays resident
            pl.BlockSpec((L, block_h), lambda h, b, i: (0, h)),
            # x: full-sequence tile, resident across the inner time axis
            pl.BlockSpec((None, L, block_h), lambda h, b, i: (b, 0, h)),
        ],
        out_specs=pl.BlockSpec((None, TO, block_h), lambda h, b, i: (b, i, h)),
        compiler_params=pltpu.CompilerParams(
            dimension_semantics=("parallel", "parallel", "parallel"),
            vmem_limit_bytes=vmem_limit,
        ),
        cost_estimate=cost,
    )(k, x)


# ------------------------- parameter / glue setup ---------------------------
def positional_embedding(d_emb: int, seq_len: int) -> jnp.ndarray:
    """PositionalEmbedding.z (without the leading batch dim): [seq_len, d_emb]."""
    t = jnp.linspace(0.0, 1.0, seq_len)[:, None]                    # [L, 1]
    bands = (d_emb - 1) // 2
    t_rescaled = jnp.linspace(0.0, seq_len - 1, seq_len)[:, None]   # [L, 1]
    w = 2.0 * math.pi * t_rescaled / seq_len                        # [L, 1]
    f = jnp.linspace(1e-4, bands - 1, bands)[None, :]               # [1, bands]
    phase = f * w                                                   # [L, bands]
    # exp(-1j * f * w): real = cos, imag = -sin
    z = jnp.concatenate([t, jnp.cos(phase), -jnp.sin(phase)], axis=-1)
    return z.astype(jnp.float32)                                    # [L, d_emb]


def init_mlp_params(key, d_emb, d_hidden, hidden_size):
    """Deterministic nn.Linear-style (uniform +/- 1/sqrt(fan_in)) init."""
    k1, k2, k3, k4 = jax.random.split(key, 4)
    lim1 = 1.0 / math.sqrt(d_emb)
    lim2 = 1.0 / math.sqrt(d_hidden)
    w1 = jax.random.uniform(k1, (d_emb, d_hidden), jnp.float32, -lim1, lim1)
    b1 = jax.random.uniform(k2, (1, d_hidden), jnp.float32, -lim1, lim1)
    w2 = jax.random.uniform(k3, (d_hidden, hidden_size), jnp.float32, -lim2, lim2)
    b2 = jax.random.uniform(k4, (1, hidden_size), jnp.float32, -lim2, lim2)
    return w1, b1, w2, b2


def compute_filter(z, w1, b1, w2, b2):
    """Implicit filter k = Linear2(ReLU(Linear1(z))): [L, H] (plain JAX, runs once)."""
    h1 = jnp.maximum(z @ w1 + b1, 0.0)
    return (h1 @ w2 + b2).astype(jnp.float32)


# --------------------- pure-JAX FFT reference (validation) ------------------
def reference_forward(x, z, w1, b1, w2, b2):
    """Mirrors the PyTorch module exactly, using FFT like fft_conv."""
    k = jnp.maximum(z @ w1 + b1, 0.0) @ w2 + b2          # [L, H]
    k_t = k.T                                            # [H, L]
    u = jnp.transpose(x, (0, 2, 1))                      # [B, H, L]
    L = u.shape[-1]
    n = 2 * L
    k_f = jnp.fft.rfft(k_t, n=n) / n
    u_f = jnp.fft.rfft(u, n=n)
    # torch.fft.irfft(..., norm='forward') applies no 1/n => multiply by n.
    y = jnp.fft.irfft(u_f * k_f, n=n) * n
    y = y[..., :L]
    out = y + u
    return jnp.transpose(out, (0, 2, 1)).astype(x.dtype)


# --------------------------------- main --------------------------------------
if __name__ == "__main__":
    B, L, H = 2, 16, 32           # batch, seq_len, hidden_size
    d_emb, d_hidden = 3, 16

    key = jax.random.PRNGKey(0)
    kx, kp = jax.random.split(key)

    x = jax.random.normal(kx, (B, L, H), dtype=jnp.float32)
    z = positional_embedding(d_emb, L)                              # [L, 3]
    w1, b1, w2, b2 = init_mlp_params(kp, d_emb, d_hidden, H)

    # Batch-independent implicit filter, computed once outside the kernel.
    k = compute_filter(z, w1, b1, w2, b2)                           # [L, H]

    y = implicit_long_convolution(x, k)
    jax.block_until_ready(y)

    y_ref = reference_forward(x, z, w1, b1, w2, b2)
    np.testing.assert_allclose(np.asarray(y), np.asarray(y_ref),
                               rtol=2e-3, atol=2e-3)

    print("KERNEL_OK")
</pallas_src>

<mosaic_0001>
module attributes {stable_mosaic.version = 11 : i64} {
  func.func @probe(%arg0: memref<8x128xf32, #tpu.memory_space<vmem>>, %arg1: memref<8x128xf32, #tpu.memory_space<vmem>>) attributes {dimension_semantics = [], scalar_prefetch = 0 : i64, scratch_operands = 0 : i64, tpu.core_type = #tpu.core_type<tc>} {
    %c3 = arith.constant 3 : index
    %c0 = arith.constant 0 : index
    %0 = tpu.strided_load %arg0[%c3, %c0] {strides = array<i32: 0, 1>} : memref<8x128xf32, #tpu.memory_space<vmem>>, vector<8x128xf32>
    %c0_0 = arith.constant 0 : index
    %c0_1 = arith.constant 0 : index
    %1 = vector.load %arg1[%c0_0, %c0_1] : memref<8x128xf32, #tpu.memory_space<vmem>>, vector<8x128xf32>
    tpu.vector_store %arg1[%c0_0, %c0_1], %0 {strides = array<i32>} : memref<8x128xf32, #tpu.memory_space<vmem>>, vector<8x128xf32>,
    return
  }
}

module attributes {stable_mosaic.version = 11 : i64} {
  func.func @kernel(%arg0: i32, %arg1: i32, %arg2: i32, %arg3: memref<16x32xf32, #tpu.memory_space<vmem>>, %arg4: memref<1x16x32xf32, #tpu.memory_space<vmem>>, %arg5: memref<1x8x32xf32, #tpu.memory_space<vmem>>) attributes {dimension_semantics = [#tpu.dimension_semantics<parallel>, #tpu.dimension_semantics<parallel>, #tpu.dimension_semantics<parallel>], iteration_bounds = array<i64: 1, 2, 2>, scalar_prefetch = 0 : i64, scratch_operands = 0 : i64, tpu.core_type = #tpu.core_type<tc>, window_params = [{transform_indices = @transform_0, window_bounds = array<i64: 16, 32>}, {transform_indices = @transform_1, window_bounds = array<i64: 1, 16, 32>}, {transform_indices = @transform_2, window_bounds = array<i64: 1, 8, 32>}]} {
    %c8_i32 = arith.constant 8 : i32
    %0 = arith.muli %arg2, %c8_i32 : i32
    %1 = tpu.assume_multiple %0, 8 : i32
    %c0 = arith.constant 0 : index
    %2 = arith.index_cast %1 : i32 to index
    %c0_0 = arith.constant 0 : index
    %3 = vector.load %arg4[%c0, %2, %c0_0] : memref<1x16x32xf32, #tpu.memory_space<vmem>>, vector<1x8x32xf32>
    %4 = vector.shape_cast %3 : vector<1x8x32xf32> to vector<8x32xf32>
    %c0_1 = arith.constant 0 : index
    %c0_2 = arith.constant 0 : index
    %5 = vector.load %arg3[%c0_1, %c0_2] : memref<16x32xf32, #tpu.memory_space<vmem>>, vector<1x32xf32>
    %6 = vector.shape_cast %5 : vector<1x32xf32> to vector<1x32xf32>
    %7 = vector.broadcast %6 : vector<1x32xf32> to vector<8x32xf32>
    %cst = arith.constant 1.000000e+00 : f32
    %8 = vector.broadcast %cst : f32 to vector<8x32xf32>
    %9 = arith.addf %7, %8 : vector<8x32xf32>
    %10 = arith.mulf %4, %9 : vector<8x32xf32>
    %c0_i32 = arith.constant 0 : i32
    %11 = arith.subi %arg2, %c0_i32 : i32
    %12 = arith.addi %c0_i32, %11 : i32
    %c1_i32 = arith.constant 1 : i32
    %13 = scf.for %arg6 = %c0_i32 to %12 step %c1_i32 iter_args(%arg7 = %10) -> (vector<8x32xf32>)  : i32 {
      %92 = arith.subi %arg2, %arg6 : i32
      %c8_i32_32 = arith.constant 8 : i32
      %93 = arith.muli %92, %c8_i32_32 : i32
      %94 = tpu.assume_multiple %93, 8 : i32
      %c1_i32_33 = arith.constant 1 : i32
      %95 = arith.subi %94, %c1_i32_33 : i32
      %c0_34 = arith.constant 0 : index
      %96 = arith.index_cast %95 : i32 to index
      %c0_35 = arith.constant 0 : index
      %97 = vector.load %arg4[%c0_34, %96, %c0_35] : memref<1x16x32xf32, #tpu.memory_space<vmem>>, vector<1x8x32xf32>
      %98 = vector.shape_cast %97 : vector<1x8x32xf32> to vector<8x32xf32>
      %c8_i32_36 = arith.constant 8 : i32
      %99 = arith.muli %arg6, %c8_i32_36 : i32
      %c1_i32_37 = arith.constant 1 : i32
      %100 = arith.addi %99, %c1_i32_37 : i32
      %101 = arith.index_cast %100 : i32 to index
      %c0_38 = arith.constant 0 : index
      %102 = vector.load %arg3[%101, %c0_38] : memref<16x32xf32, #tpu.memory_space<vmem>>, vector<1x32xf32>
      %103 = vector.shape_cast %102 : vector<1x32xf32> to vector<1x32xf32>
      %104 = vector.broadcast %103 : vector<1x32xf32> to vector<8x32xf32>
      %105 = arith.mulf %98, %104 : vector<8x32xf32>
      %106 = arith.addf %arg7, %105 : vector<8x32xf32>
      %c2_i32_39 = arith.constant 2 : i32
      %107 = arith.subi %94, %c2_i32_39 : i32
      %c0_40 = arith.constant 0 : index
      %108 = arith.index_cast %107 : i32 to index
      %c0_41 = arith.constant 0 : index
      %109 = vector.load %arg4[%c0_40, %108, %c0_41] : memref<1x16x32xf32, #tpu.memory_space<vmem>>, vector<1x8x32xf32>
      %110 = vector.shape_cast %109 : vector<1x8x32xf32> to vector<8x32xf32>
      %c8_i32_42 = arith.constant 8 : i32
      %111 = arith.muli %arg6, %c8_i32_42 : i32
      %c2_i32_43 = arith.constant 2 : i32
      %112 = arith.addi %111, %c2_i32_43 : i32
      %113 = arith.index_cast %112 : i32 to index
      %c0_44 = arith.constant 0 : index
      %114 = vector.load %arg3[%113, %c0_44] : memref<16x32xf32, #tpu.memory_space<vmem>>, vector<1x32xf32>
      %115 = vector.shape_cast %114 : vector<1x32xf32> to vector<1x32xf32>
      %116 = vector.broadcast %115 : vector<1x32xf32> to vector<8x32xf32>
      %117 = arith.mulf %110, %116 : vector<8x32xf32>
      %118 = arith.addf %106, %117 : vector<8x32xf32>
      %c3_i32_45 = arith.constant 3 : i32
      %119 = arith.subi %94, %c3_i32_45 : i32
      %c0_46 = arith.constant 0 : index
      %120 = arith.index_cast %119 : i32 to index
      %c0_47 = arith.constant 0 : index
      %121 = vector.load %arg4[%c0_46, %120, %c0_47] : memref<1x16x32xf32, #tpu.memory_space<vmem>>, vector<1x8x32xf32>
      %122 = vector.shape_cast %121 : vector<1x8x32xf32> to vector<8x32xf32>
      %c8_i32_48 = arith.constant 8 : i32
      %123 = arith.muli %arg6, %c8_i32_48 : i32
      %c3_i32_49 = arith.constant 3 : i32
      %124 = arith.addi %123, %c3_i32_49 : i32
      %125 = arith.index_cast %124 : i32 to index
      %c0_50 = arith.constant 0 : index
      %126 = vector.load %arg3[%125, %c0_50] : memref<16x32xf32, #tpu.memory_space<vmem>>, vector<1x32xf32>
      %127 = vector.shape_cast %126 : vector<1x32xf32> to vector<1x32xf32>
      %128 = vector.broadcast %127 : vector<1x32xf32> to vector<8x32xf32>
      %129 = arith.mulf %122, %128 : vector<8x32xf32>
      %130 = arith.addf %118, %129 : vector<8x32xf32>
      %c4_i32_51 = arith.constant 4 : i32
      %131 = arith.subi %94, %c4_i32_51 : i32
      %c0_52 = arith.constant 0 : index
      %132 = arith.index_cast %131 : i32 to index
      %c0_53 = arith.constant 0 : index
      %133 = vector.load %arg4[%c0_52, %132, %c0_53] : memref<1x16x32xf32, #tpu.memory_space<vmem>>, vector<1x8x32xf32>
      %134 = vector.shape_cast %133 : vector<1x8x32xf32> to vector<8x32xf32>
      %c8_i32_54 = arith.constant 8 : i32
      %135 = arith.muli %arg6, %c8_i32_54 : i32
      %c4_i32_55 = arith.constant 4 : i32
      %136 = arith.addi %135, %c4_i32_55 : i32
      %137 = arith.index_cast %136 : i32 to index
      %c0_56 = arith.constant 0 : index
      %138 = vector.load %arg3[%137, %c0_56] : memref<16x32xf32, #tpu.memory_space<vmem>>, vector<1x32xf32>
      %139 = vector.shape_cast %138 : vector<1x32xf32> to vector<1x32xf32>
      %140 = vector.broadcast %139 : vector<1x32xf32> to vector<8x32xf32>
      %141 = arith.mulf %134, %140 : vector<8x32xf32>
      %142 = arith.addf %130, %141 : vector<8x32xf32>
      %c5_i32_57 = arith.constant 5 : i32
      %143 = arith.subi %94, %c5_i32_57 : i32
      %c0_58 = arith.constant 0 : index
      %144 = arith.index_cast %143 : i32 to index
      %c0_59 = arith.constant 0 : index
      %145 = vector.load %arg4[%c0_58, %144, %c0_59] : memref<1x16x32xf32, #tpu.memory_space<vmem>>, vector<1x8x32xf32>
      %146 = vector.shape_cast %145 : vector<1x8x32xf32> to vector<8x32xf32>
      %c8_i32_60 = arith.constant 8 : i32
      %147 = arith.muli %arg6, %c8_i32_60 : i32
      %c5_i32_61 = arith.constant 5 : i32
      %148 = arith.addi %147, %c5_i32_61 : i32
      %149 = arith.index_cast %148 : i32 to index
      %c0_62 = arith.constant 0 : index
      %150 = vector.load %arg3[%149, %c0_62] : memref<16x32xf32, #tpu.memory_space<vmem>>, vector<1x32xf32>
      %151 = vector.shape_cast %150 : vector<1x32xf32> to vector<1x32xf32>
      %152 = vector.broadcast %151 : vector<1x32xf32> to vector<8x32xf32>
      %153 = arith.mulf %146, %152 : vector<8x32xf32>
      %154 = arith.addf %142, %153 : vector<8x32xf32>
      %c6_i32_63 = arith.constant 6 : i32
      %155 = arith.subi %94, %c6_i32_63 : i32
      %c0_64 = arith.constant 0 : index
      %156 = arith.index_cast %155 : i32 to index
      %c0_65 = arith.constant 0 : index
      %157 = vector.load %arg4[%c0_64, %156, %c0_65] : memref<1x16x32xf32, #tpu.memory_space<vmem>>, vector<1x8x32xf32>
      %158 = vector.shape_cast %157 : vector<1x8x32xf32> to vector<8x32xf32>
      %c8_i32_66 = arith.constant 8 : i32
      %159 = arith.muli %arg6, %c8_i32_66 : i32
      %c6_i32_67 = arith.constant 6 : i32
      %160 = arith.addi %159, %c6_i32_67 : i32
      %161 = arith.index_cast %160 : i32 to index
      %c0_68 = arith.constant 0 : index
      %162 = vector.load %arg3[%161, %c0_68] : memref<16x32xf32, #tpu.memory_space<vmem>>, vector<1x32xf32>
      %163 = vector.shape_cast %162 : vector<1x32xf32> to vector<1x32xf32>
      %164 = vector.broadcast %163 : vector<1x32xf32> to vector<8x32xf32>
      %165 = arith.mulf %158, %164 : vector<8x32xf32>
      %166 = arith.addf %154, %165 : vector<8x32xf32>
      %c7_i32_69 = arith.constant 7 : i32
      %167 = arith.subi %94, %c7_i32_69 : i32
      %c0_70 = arith.constant 0 : index
      %168 = arith.index_cast %167 : i32 to index
      %c0_71 = arith.constant 0 : index
      %169 = vector.load %arg4[%c0_70, %168, %c0_71] : memref<1x16x32xf32, #tpu.memory_space<vmem>>, vector<1x8x32xf32>
      %170 = vector.shape_cast %169 : vector<1x8x32xf32> to vector<8x32xf32>
      %c8_i32_72 = arith.constant 8 : i32
      %171 = arith.muli %arg6, %c8_i32_72 : i32
      %c7_i32_73 = arith.constant 7 : i32
      %172 = arith.addi %171, %c7_i32_73 : i32
      %173 = arith.index_cast %172 : i32 to index
      %c0_74 = arith.constant 0 : index
      %174 = vector.load %arg3[%173, %c0_74] : memref<16x32xf32, #tpu.memory_space<vmem>>, vector<1x32xf32>
      %175 = vector.shape_cast %174 : vector<1x32xf32> to vector<1x32xf32>
      %176 = vector.broadcast %175 : vector<1x32xf32> to vector<8x32xf32>
      %177 = arith.mulf %170, %176 : vector<8x32xf32>
      %178 = arith.addf %166, %177 : vector<8x32xf32>
      %c8_i32_75 = arith.constant 8 : i32
      %179 = arith.subi %94, %c8_i32_75 : i32
      %c0_76 = arith.constant 0 : index
      %180 = arith.index_cast %179 : i32 to index
      %c0_77 = arith.constant 0 : index
      %181 = vector.load %arg4[%c0_76, %180, %c0_77] : memref<1x16x32xf32, #tpu.memory_space<vmem>>, vector<1x8x32xf32>
      %182 = vector.shape_cast %181 : vector<1x8x32xf32> to vector<8x32xf32>
      %c8_i32_78 = arith.constant 8 : i32
      %183 = arith.muli %arg6, %c8_i32_78 : i32
      %c8_i32_79 = arith.constant 8 : i32
      %184 = arith.addi %183, %c8_i32_79 : i32
      %185 = arith.index_cast %184 : i32 to index
      %c0_80 = arith.constant 0 : index
      %186 = vector.load %arg3[%185, %c0_80] : memref<16x32xf32, #tpu.memory_space<vmem>>, vector<1x32xf32>
      %187 = vector.shape_cast %186 : vector<1x32xf32> to vector<1x32xf32>
      %188 = vector.broadcast %187 : vector<1x32xf32> to vector<8x32xf32>
      %189 = arith.mulf %182, %188 : vector<8x32xf32>
      %190 = arith.addf %178, %189 : vector<8x32xf32>
      scf.yield %190 : vector<8x32xf32>
    }
    %c0_3 = arith.constant 0 : index
    %c0_4 = arith.constant 0 : index
    %c0_5 = arith.constant 0 : index
    %14 = vector.load %arg4[%c0_3, %c0_4, %c0_5] : memref<1x16x32xf32, #tpu.memory_space<vmem>>, vector<1x8x32xf32>
    %15 = vector.shape_cast %14 : vector<1x8x32xf32> to vector<8x32xf32>
    %16 = tpu.iota {dimensions = array<i32: 0>} : vector<8x32xi32>
    %c0_i32_6 = arith.constant 0 : i32
    %17 = vector.broadcast %c0_i32_6 : i32 to vector<8x32xi32>
    %18 = arith.cmpi sgt, %16, %17 : vector<8x32xi32>
    %c1_i32_7 = arith.constant 1 : i32
    %19 = tpu.dynamic_rotate %15 by %c1_i32_7 dim 0 : vector<8x32xf32>, i32 -> vector<8x32xf32>
    %cst_8 = arith.constant 0.000000e+00 : f32
    %20 = vector.broadcast %cst_8 : f32 to vector<8x32xf32>
    %21 = arith.select %18, %19, %20 : vector<8x32xi1>, vector<8x32xf32>
    %c1_i32_9 = arith.constant 1 : i32
    %22 = arith.addi %1, %c1_i32_9 : i32
    %23 = arith.index_cast %22 : i32 to index
    %c0_10 = arith.constant 0 : index
    %24 = vector.load %arg3[%23, %c0_10] : memref<16x32xf32, #tpu.memory_space<vmem>>, vector<1x32xf32>
    %25 = vector.shape_cast %24 : vector<1x32xf32> to vector<1x32xf32>
    %26 = vector.broadcast %25 : vector<1x32xf32> to vector<8x32xf32>
    %27 = arith.mulf %21, %26 : vector<8x32xf32>
    %28 = arith.addf %13, %27 : vector<8x32xf32>
    %c1_i32_11 = arith.constant 1 : i32
    %29 = tpu.dynamic_rotate %21 by %c1_i32_11 dim 0 : vector<8x32xf32>, i32 -> vector<8x32xf32>
    %cst_12 = arith.constant 0.000000e+00 : f32
    %30 = vector.broadcast %cst_12 : f32 to vector<8x32xf32>
    %31 = arith.select %18, %29, %30 : vector<8x32xi1>, vector<8x32xf32>
    %c2_i32 = arith.constant 2 : i32
    %32 = arith.addi %1, %c2_i32 : i32
    %33 = arith.index_cast %32 : i32 to index
    %c0_13 = arith.constant 0 : index
    %34 = vector.load %arg3[%33, %c0_13] : memref<16x32xf32, #tpu.memory_space<vmem>>, vector<1x32xf32>
    %35 = vector.shape_cast %34 : vector<1x32xf32> to vector<1x32xf32>
    %36 = vector.broadcast %35 : vector<1x32xf32> to vector<8x32xf32>
    %37 = arith.mulf %31, %36 : vector<8x32xf32>
    %38 = arith.addf %28, %37 : vector<8x32xf32>
    %c1_i32_14 = arith.constant 1 : i32
    %39 = tpu.dynamic_rotate %31 by %c1_i32_14 dim 0 : vector<8x32xf32>, i32 -> vector<8x32xf32>
    %cst_15 = arith.constant 0.000000e+00 : f32
    %40 = vector.broadcast %cst_15 : f32 to vector<8x32xf32>
    %41 = arith.select %18, %39, %40 : vector<8x32xi1>, vector<8x32xf32>
    %c3_i32 = arith.constant 3 : i32
    %42 = arith.addi %1, %c3_i32 : i32
    %43 = arith.index_cast %42 : i32 to index
    %c0_16 = arith.constant 0 : index
    %44 = vector.load %arg3[%43, %c0_16] : memref<16x32xf32, #tpu.memory_space<vmem>>, vector<1x32xf32>
    %45 = vector.shape_cast %44 : vector<1x32xf32> to vector<1x32xf32>
    %46 = vector.broadcast %45 : vector<1x32xf32> to vector<8x32xf32>
    %47 = arith.mulf %41, %46 : vector<8x32xf32>
    %48 = arith.addf %38, %47 : vector<8x32xf32>
    %c1_i32_17 = arith.constant 1 : i32
    %49 = tpu.dynamic_rotate %41 by %c1_i32_17 dim 0 : vector<8x32xf32>, i32 -> vector<8x32xf32>
    %cst_18 = arith.constant 0.000000e+00 : f32
    %50 = vector.broadcast %cst_18 : f32 to vector<8x32xf32>
    %51 = arith.select %18, %49, %50 : vector<8x32xi1>, vector<8x32xf32>
    %c4_i32 = arith.constant 4 : i32
    %52 = arith.addi %1, %c4_i32 : i32
    %53 = arith.index_cast %52 : i32 to index
    %c0_19 = arith.constant 0 : index
    %54 = vector.load %arg3[%53, %c0_19] : memref<16x32xf32, #tpu.memory_space<vmem>>, vector<1x32xf32>
    %55 = vector.shape_cast %54 : vector<1x32xf32> to vector<1x32xf32>
    %56 = vector.broadcast %55 : vector<1x32xf32> to vector<8x32xf32>
    %57 = arith.mulf %51, %56 : vector<8x32xf32>
    %58 = arith.addf %48, %57 : vector<8x32xf32>
    %c1_i32_20 = arith.constant 1 : i32
    %59 = tpu.dynamic_rotate %51 by %c1_i32_20 dim 0 : vector<8x32xf32>, i32 -> vector<8x32xf32>
    %cst_21 = arith.constant 0.000000e+00 : f32
    %60 = vector.broadcast %cst_21 : f32 to vector<8x32xf32>
    %61 = arith.select %18, %59, %60 : vector<8x32xi1>, vector<8x32xf32>
    %c5_i32 = arith.constant 5 : i32
    %62 = arith.addi %1, %c5_i32 : i32
    %63 = arith.index_cast %62 : i32 to index
    %c0_22 = arith.constant 0 : index
    %64 = vector.load %arg3[%63, %c0_22] : memref<16x32xf32, #tpu.memory_space<vmem>>, vector<1x32xf32>
    %65 = vector.shape_cast %64 : vector<1x32xf32> to vector<1x32xf32>
    %66 = vector.broadcast %65 : vector<1x32xf32> to vector<8x32xf32>
    %67 = arith.mulf %61, %66 : vector<8x32xf32>
    %68 = arith.addf %58, %67 : vector<8x32xf32>
    %c1_i32_23 = arith.constant 1 : i32
    %69 = tpu.dynamic_rotate %61 by %c1_i32_23 dim 0 : vector<8x32xf32>, i32 -> vector<8x32xf32>
    %cst_24 = arith.constant 0.000000e+00 : f32
    %70 = vector.broadcast %cst_24 : f32 to vector<8x32xf32>
    %71 = arith.select %18, %69, %70 : vector<8x32xi1>, vector<8x32xf32>
    %c6_i32 = arith.constant 6 : i32
    %72 = arith.addi %1, %c6_i32 : i32
    %73 = arith.index_cast %72 : i32 to index
    %c0_25 = arith.constant 0 : index
    %74 = vector.load %arg3[%73, %c0_25] : memref<16x32xf32, #tpu.memory_space<vmem>>, vector<1x32xf32>
    %75 = vector.shape_cast %74 : vector<1x32xf32> to vector<1x32xf32>
    %76 = vector.broadcast %75 : vector<1x32xf32> to vector<8x32xf32>
    %77 = arith.mulf %71, %76 : vector<8x32xf32>
    %78 = arith.addf %68, %77 : vector<8x32xf32>
    %c1_i32_26 = arith.constant 1 : i32
    %79 = tpu.dynamic_rotate %71 by %c1_i32_26 dim 0 : vector<8x32xf32>, i32 -> vector<8x32xf32>
    %cst_27 = arith.constant 0.000000e+00 : f32
    %80 = vector.broadcast %cst_27 : f32 to vector<8x32xf32>
    %81 = arith.select %18, %79, %80 : vector<8x32xi1>, vector<8x32xf32>
    %c7_i32 = arith.constant 7 : i32
    %82 = arith.addi %1, %c7_i32 : i32
    %83 = arith.index_cast %82 : i32 to index
    %c0_28 = arith.constant 0 : index
    %84 = vector.load %arg3[%83, %c0_28] : memref<16x32xf32, #tpu.memory_space<vmem>>, vector<1x32xf32>
    %85 = vector.shape_cast %84 : vector<1x32xf32> to vector<1x32xf32>
    %86 = vector.broadcast %85 : vector<1x32xf32> to vector<8x32xf32>
    %87 = arith.mulf %81, %86 : vector<8x32xf32>
    %88 = arith.addf %78, %87 : vector<8x32xf32>
    %c0_29 = arith.constant 0 : index
    %c0_30 = arith.constant 0 : index
    %c0_31 = arith.constant 0 : index
    %89 = vector.load %arg5[%c0_29, %c0_30, %c0_31] : memref<1x8x32xf32, #tpu.memory_space<vmem>>, vector<1x8x32xf32>
    %90 = vector.shape_cast %89 : vector<1x8x32xf32> to vector<8x32xf32>
    %91 = vector.shape_cast %88 : vector<8x32xf32> to vector<1x8x32xf32>
    tpu.vector_store %arg5[%c0_29, %c0_30, %c0_31], %91 {strides = array<i32>} : memref<1x8x32xf32, #tpu.memory_space<vmem>>, vector<1x8x32xf32>,
    return
  }
  func.func @transform_0(%arg0: i32, %arg1: i32, %arg2: i32) -> (i32, i32) {
    %c0_i32 = arith.constant 0 : i32
    %c0_i32_0 = arith.constant 0 : i32
    return %c0_i32, %arg0 : i32, i32
  }
  func.func @transform_1(%arg0: i32, %arg1: i32, %arg2: i32) -> (i32, i32, i32) {
    %c0_i32 = arith.constant 0 : i32
    %c0_i32_0 = arith.constant 0 : i32
    return %arg1, %c0_i32, %arg0 : i32, i32, i32
  }
  func.func @transform_2(%arg0: i32, %arg1: i32, %arg2: i32) -> (i32, i32, i32) {
    %c0_i32 = arith.constant 0 : i32
    return %arg1, %arg2, %arg0 : i32, i32, i32
  }
}

</mosaic_0001>

<bundles_post_ra>
// kernel: tpu_custom_call.1
= control target key start
LH: loop header
LB: loop body
LE: loop exit
PB: predicated region body
PF: predicated region fallthrough
CT: control target
= control target key end

     0   :  { %6 = vsyncpa [#allocation3], 0  ;;  %s124_s0 = inlined_call_operand.hbm [shape: f32[8,128], index: 0, kind: input, shape index: {}]   ;;  %s125_s1 = inlined_call_operand.hbm [shape: f32[8,128], index: 1, kind: output, shape index: {}]  }
   0x1   :  { %7 = vsyncpa [#allocation4], 0  ;;  %s88_s6 = smov [#allocation2]   ;;  %s40_s10 = scalar_lea.hbm %s124_s0, 128 }
   0x2   :  { %s14_s7 = sshll.u32 %s88_s6, 4  ;;  %p41_p0 = scmp.ne.s32.totalorder %s124_s0, %s40_s10  ;;  %s15_s7 = int_to_ptr.vmem [resolvable:$true] %s14_s7 }
   0x3   :  { %p44_p1 = scmp.lt.u32.totalorder %s40_s10, %s124_s0 }
   0x5   :  { %p46_p2 = pnand %p44_p1, %p41_p0 }
   0x7   :  { %49 = shalt.err (!%p46_p2)
}
   0x8   :  { %s50_s15 = scalar_lea.vmem %s15_s7, 128  ;;  %p55_p4 = scmp.lt.s32.totalorder %s15_s7, %s15_s7 }
   0x9   :  { %p51_p3 = scmp.ne.s32.totalorder %s15_s7, %s50_s15  ;;  %p56_p5 = scmp.lt.s32.totalorder %s50_s15, %s50_s15 }
   0xb   :  { %p57_p6 = por %p56_p5, %p55_p4 }
   0xd   :  { %p58_p7 = pnand %p57_p6, %p51_p3 }
   0xf   :  { %61 = shalt.err (!%p58_p7)
}
  0x10   :  { %17 = dma.hbm_to_vmem [thread:$0]  %s124_s0, 128, %s15_s7, [#allocation3]  }
  0x11   :  { %84 = dma.done.wait [#allocation3], 128  }
  0x12   :  { %85 = vsyncadd [#allocation3], 4294967168  ;;  %s89_s18 = smov [#allocation5]   ;;  %v21_v0 = vld [vmem:[#allocation2 + $0x3] ss:$0 sm:$0xff] }
  0x13   :  { %s29_s19 = sshll.u32 %s89_s18, 4  ;;  %22 = vst [vmem:[#allocation5] sm:$0xff] %v21_v0  ;;  %s30_s19 = int_to_ptr.vmem [resolvable:$true] %s29_s19 }
  0x14   :  { %s62_s20 = scalar_lea.vmem %s30_s19, 128  ;;  %p67_p9 = scmp.lt.s32.totalorder %s30_s19, %s30_s19 }
  0x15   :  { %p63_p8 = scmp.ne.s32.totalorder %s30_s19, %s62_s20  ;;  %p68_p10 = scmp.lt.s32.totalorder %s62_s20, %s62_s20 }
  0x17   :  { %p69_p11 = por %p68_p10, %p67_p9 }
  0x19   :  { %p70_p12 = pnand %p69_p11, %p63_p8 }
  0x1b   :  { %73 = shalt.err (!%p70_p12)
}
  0x1c   :  { %s74_s23 = scalar_lea.hbm %s125_s1, 128 }
  0x1d   :  { %p75_p13 = scmp.ne.s32.totalorder %s125_s1, %s74_s23  ;;  %p78_p0 = scmp.lt.u32.totalorder %s74_s23, %s125_s1 }
  0x1f   :  { %p80_p1 = pnand %p78_p0, %p75_p13 }
  0x21   :  { %83 = shalt.err (!%p80_p1)
}
  0x22   :  { %32 = dma.vmem_to_hbm [thread:$0]  %s30_s19, 128, %s125_s1, [#allocation4]  }
  0x23   :  { %86 = dma.done.wait [#allocation4], 128  }
  0x24   :  { %87 = vsyncadd [#allocation4], 4294967168 }
  0x25   :  { %36 = vsyncpa [#allocation3], 1 }
  0x26   :  { %37 = vsyncpa [#allocation4], 1 }

// kernel: tpu_custom_call.1
= control target key start
LH: loop header
LB: loop body
LE: loop exit
PB: predicated region body
PF: predicated region fallthrough
CT: control target
= control target key end

     0   :  { %s1385_s0 = inlined_call_operand.hbm [shape: f32[16,32], index: 0, kind: input, shape index: {}]   ;;  %s1386_s1 = inlined_call_operand.hbm [shape: f32[2,16,32], index: 1, kind: input, shape index: {}]   ;;  %s1387_s2 = inlined_call_operand.hbm [shape: f32[2,16,32], index: 2, kind: output, shape index: {}]  }
   0x1   :  { %1400 = sst [smem:[#allocation15_spill]] %s1385_s0 }
   0x2   :  { %7 = vsyncpa [#allocation3], 0 }
   0x3   :  { %8 = vsyncpa [#allocation6], 0 }
   0x4   :  { %10 = vsyncpa [#allocation6 + $0x1], 0 }
   0x5   :  { %11 = vsyncpa [#allocation4], 0 }
   0x6   :  { %13 = vsyncpa [#allocation4 + $0x1], 0  ;;  %s1036_s9 = smov 0   ;;  %s1038_s10 = smov 0  }
   0x7   :  { %s1040_s11 = smov 0   ;;  %s1042_s12 = smov 0  }
   0x8   :  { %s1044_s13 = smov 0   ;;  %s1046_s14 = smov 0  }
   0x9   :  { %s1048_s15 = smov 0   ;;  %s1050_s16 = smov 0  }
   0xa   :  { %s1052_s17 = smov 0   ;;  %s1054_s18 = smov 0  }
   0xb   :  { %s1056_s19 = smov 0  }
   0xc LB: > { %1401 = sst [smem:[#allocation11_spill]] %s994_s17  ;;  %s592_s20 = sadd.s32 4294967295, %s1002_s19   ;;  %s1002_s19 = sphi %s1056_s19, %s19_s19   ;;  %s998_s18 = sphi %s1054_s18, %s1435_s18   ;;  %s994_s17 = sphi %s1052_s17, %s1426_s17   ;;  %s990_s16 = sphi %s1050_s16, %s1434_s16   ;;  %s986_s15 = sphi %s1048_s15, %s1425_s15   ;;  %s982_s14 = sphi %s1046_s14, %s1433_s14   ;;  %s978_s13 = sphi %s1044_s13, %s1432_s13   ;;  %s974_s12 = sphi %s1042_s12, %s1431_s12   ;;  %s970_s11 = sphi %s1040_s11, %s1430_s11   ;;  %s966_s10 = sphi %s1038_s10, %s1429_s10   ;;  %s962_s9 = sphi %s1036_s9, %s1428_s9  }
   0xd   : > { %s593_s21 = sadd.s32 4294967294, %s1002_s19   ;;  %p86_p0 = scmp.ne.s32.totalorder %s978_s13, %s974_s12 }
   0xe   : > { %p1092_p1 = scmp.eq.s32.totalorder %s592_s20, 0  ;;  %s103_s23 = sadd.s32 1, %s970_s11 }
   0xf   : > { %p113_p2 = scmp.ne.s32.totalorder %s970_s11, %s966_s10  ;;  %p114_p4 = scmp.eq.s32.totalorder %s592_s20, 3 }
  0x10   : > { %s1402_s22 = scalar_select %p1092_p1, 1, 0 }
  0x11   : > { %p1101_p3 = por %p1092_p1, %p86_p0  ;;  %p119_p5 = scmp.ne.s32.totalorder %s966_s10, %s962_s9 }
  0x12   : > { %p120_p6 = scmp.eq.s32.totalorder %s593_s21, 3  ;;  %p1107_p7 = por %p114_p4, %p113_p2 }
  0x13   : > { %s1403_s24 = scalar_select %p1101_p3, 1, 0 }
  0x14   : > { %s1404_s25 = scalar_select %p1107_p7, 1, 0 }
  0x15   : > { %p594_p8 = scmp.ge.s32.totalorder %s1002_s19, 1  ;;  %p1112_p9 = por %p120_p6, %p119_p5 }
  0x16   : > { %p127_p10 = scmp.lt.s32.totalorder %s1002_s19, 5  ;;  %s1016_s28 = smov [#allocation2]  }
  0x17   : > { %s1405_s26 = scalar_select %p1112_p9, 1, 0 }
  0x18   : > { %p1117_p11 = pnand %p594_p8, %p127_p10  ;;  %s141_s29 = sshll.u32 %s1016_s28, 4  ;;  %s142_s29 = int_to_ptr.vmem [resolvable:$true] %s141_s29 }
  0x19   : > { %1406 = sst [smem:[#allocation12_spill]] %s1405_s26  ;;  %s1409_s0 = sld [smem:[#allocation15_spill]] }
  0x1a   : > { %s1407_s27 = scalar_select %p1117_p11, 1, 0 }
  0x1b   : > { %p675_p12 = pneg %p1117_p11 }
  0x1d   : > { %p1125_p13 = pnand %p675_p12, %p1092_p1 }
  0x1f   : > { %s806_s5 = scalar_lea.hbm %s1409_s0, 256  ;;  %p808_p2 = pneg %p1125_p13 }
  0x20   : > { %p807_p0 = scmp.ne.s32.totalorder %s1409_s0, %s806_s5  ;;  %p813_p6 = scmp.lt.u32.totalorder %s806_s5, %s1409_s0 }
  0x22   : > { %p809_p4 = pnand %p808_p2, %p807_p0 }
  0x24   : > { %p810_p5 = pneg %p809_p4 }
  0x26   : > { %p815_p8 = pnand %p813_p6, %p810_p5 }
  0x28   : > { %818 = shalt.err (!%p815_p8)
}
  0x29   : > { %s819_s20 = scalar_lea.vmem %s142_s29, 256  ;;  %p827_p7 = scmp.lt.s32.totalorder %s142_s29, %s142_s29 }
  0x2a   : > { %p820_p10 = scmp.ne.s32.totalorder %s142_s29, %s819_s20  ;;  %p828_p3 = scmp.lt.s32.totalorder %s819_s20, %s819_s20 }
  0x2c   : > { %p822_p12 = pnand %p820_p10, %p808_p2  ;;  %p829_p1 = por %p828_p3, %p827_p7 }
  0x2e   : > { %p823_p9 = pneg %p822_p12 }
  0x30   : > { %p830_p11 = pnand %p829_p1, %p823_p9 }
  0x32   : > { %833 = shalt.err (!%p830_p11)
}
  0x33   : > { %s1393_s21 = smov 128   ;;  %s1394_s28 = smov 8  }
  0x34   : > { %678 = dma.hbm_to_vmem [thread:$0]  (!%p1125_p13), %s1409_s0, 256, %s142_s29, [#allocation3], %s1393_s21, %s1393_s21, %s1394_s28  }
  0x35   : > { %s31_s5 = sadd.s32 1, %s994_s17  ;;  %s34_s6 = sadd.s32 1, %s998_s18 }
  0x36   : > { %p32_p1 = scmp.ge.s32.totalorder %s31_s5, 2  ;;  %s73_s7 = sadd.s32 1, %s982_s14 }
  0x37   : > { %p80_p3 = scmp.ne.s32.totalorder %s982_s14, %s978_s13  ;;  %p81_p7 = scmp.eq.s32.totalorder %s1002_s19, 0 }
  0x38   : > { %s1437_s5 = smov (%p32_p1, %s31_s5), 0  ;;  %s1439_s6 = smov (!%p32_p1, %s34_s6), %s998_s18 }
  0x39   : > { %1410 = sst [smem:[#allocation13_spill]] %s1437_s5  ;;  %s97_s30 = ssub.s32 %s994_s17, %s1437_s5 }
  0x3a   : > { %p36_p9 = scmp.ge.s32.totalorder %s1439_s6, 2  ;;  %p688_p11 = scmp.lt.s32.totalorder %s1002_s19, 4 }
  0x3b   : > { %p1160_p13 = por %p81_p7, %p80_p3  ;;  %s155_s8 = sand.u32 1, %s982_s14  }
  0x3c   : > { %s1441_s6 = smov (%p36_p9, %s1439_s6), 0  ;;  %s597_s12 = sshll.u32 %s155_s8, 4 }
  0x3d   : > { %1412 = sst [smem:[#allocation14_spill]] %s1441_s6  ;;  %s68_s20 = ssub.s32 %s998_s18, %s1441_s6 }
  0x3e   : > { %p71_p0 = scmp.eq.s32.totalorder %s68_s20, 0  ;;  %s98_s3 = sor.u32 %s97_s30, %s68_s20 }
  0x3f   : > { %p101_p2 = scmp.eq.s32.totalorder %s98_s3, 0  ;;  %s666_s4 = sshll.u32 %s998_s18, 8 }
  0x40   : > { %s1171_s21 = scalar_select %p71_p0, %s982_s14, %s73_s7  }
  0x41   : > { %s1176_s28 = scalar_select %p101_p2, %s970_s11, %s103_s23  }
  0x42   : > { %s1181_s17 = scalar_lea.hbm %s1386_s1, %s666_s4  ;;  %s159_s26 = scalar_lea.vmem [#allocation5], %s597_s12 }
  0x43   : > { %s167_s6 = sshll.u32 %s159_s26, 4  ;;  %p1189_p4 = pnand %p688_p11, %p1160_p13  ;;  %s1183_s6 = int_to_ptr.vmem [resolvable:$true] %s167_s6 }
  0x44   : > { %s1193_s23 = scalar_lea.sflag [#allocation6], %s155_s8  ;;  %s834_s0 = scalar_lea.hbm %s1181_s17, 256 }
  0x45   : > { %p835_p5 = scmp.ne.s32.totalorder %s1181_s17, %s834_s0  ;;  %p836_p6 = pneg %p1189_p4 }
  0x46   : > { %s839_s30 = scalar_lea.hbm %s1386_s1, 512  ;;  %p840_p12 = scmp.lt.u32.totalorder %s1181_s17, %s1386_s1 }
  0x47   : > { %p837_p8 = pnand %p836_p6, %p835_p5  ;;  %p841_p1 = scmp.lt.u32.totalorder %s839_s30, %s834_s0 }
  0x48   : > { %p843_p7 = scmp.lt.u32.totalorder %s834_s0, %s1181_s17 }
  0x49   : > { %p838_p10 = pneg %p837_p8  ;;  %p842_p3 = por %p841_p1, %p840_p12 }
  0x4b   : > { %p844_p9 = por %p843_p7, %p842_p3 }
  0x4d   : > { %p845_p11 = pnand %p844_p9, %p838_p10 }
  0x4f   : > { %848 = shalt.err (!%p845_p11)
}
  0x50   : > { %s849_s8 = scalar_lea.vmem %s1183_s6, 256  ;;  %s1019_s20 = smov [#allocation5]  }
  0x51   : > { %p850_p13 = scmp.ne.s32.totalorder %s1183_s6, %s849_s8  ;;  %s854_s3 = sshll.u32 %s1019_s20, 4  ;;  %s855_s3 = int_to_ptr.vmem [resolvable:$false] %s854_s3 }
  0x52   : > { %s856_s4 = scalar_lea.vmem %s855_s3, 512  ;;  %p857_p5 = scmp.lt.s32.totalorder %s1183_s6, %s855_s3 }
  0x53   : > { %p852_p0 = pnand %p850_p13, %p836_p6  ;;  %p858_p8 = scmp.lt.s32.totalorder %s856_s4, %s849_s8 }
  0x55   : > { %p853_p2 = pneg %p852_p0  ;;  %p859_p12 = por %p858_p8, %p857_p5 }
  0x57   : > { %p860_p1 = pnand %p859_p12, %p853_p2 }
  0x59   : > { %863 = shalt.err (!%p860_p1)
}
  0x5a   : > { %s1414_s0 = smov 8   ;;  %s1415_s26 = smov 128  }
  0x5b   : > { %682 = dma.hbm_to_vmem [thread:$0]  (!%p1189_p4), %s1181_s17, 256, %s1183_s6, %s1193_s23, %s1415_s26, %s1415_s26, %s1414_s0  }
  0x5c   : > { %p1416_p6 = scmp.ne.s32.totalorder %s1407_s27, 0 }
  0x5d   : > { %p1417_p10 = scmp.ne.s32.totalorder (!%p1416_p6), %s1402_s22, 0 }
  0x5e   : > { %179 = sbr.rel (%p1416_p6) target bundleno = 183 (0xb7), region = 28 }
  0x65   : > { %949 = dma.done.wait (%p1417_p10), [#allocation3], 256  }
  0x66   : > { %951 = vsyncadd (%p1417_p10), [#allocation3], 4294967040  ;;  %s185_s5 = sand.u32 1, %s978_s13   ;;  %p1418_p3 = scmp.ne.s32.totalorder %s1403_s24, 0 }
  0x67   : > { %s602_s7 = sshll.u32 %s185_s5, 4  ;;  %s186_s30 = scalar_lea.sflag [#allocation6], %s185_s5 }
  0x68   : > { %s1231_s29 = scalar_lea.vmem [#allocation5], %s602_s7 }
  0x69   : > { %953 = dma.done.wait (%p1418_p3), %s186_s30, 256  }
  0x6a   : > { %955 = vsyncadd (%p1418_p3), %s186_s30, 4294967040  ;;  %s1399_s17 = sand.u32 1, %s966_s10   ;;  %s604_s22 = sshll.u32 %s986_s15, 3  ;;  %v605_v1 = vld [vmem:[#allocation2] ss:$0 sm:$0xff] }
  0x6b   : > { %s1241_s27 = sshll.u32 %s1399_s17, 3  ;;  %s211_s6 = scalar_lea.vmem %s1231_s29, %s604_s22 [#allocation5]  ;;  %v218_v2 = vadd.f32 1.0, %v605_v1 }
  0x6c   : > { %v212_v0 = vld [vmem:[%s211_s6] sm:$0xff]  ;;  %s209_s23 = scalar_lea.vmem [#allocation7], %s1241_s27  ;;  %p606_p4 = scmp.le.s32.totalorder %s986_s15, 0 }
  0x6d   : > { %v219_v3 = vmul.f32 %v218_v2, %v212_v0   ;;  %s1250_s24 = smov (!%p606_p4), 0  }
  0x6e   : > { %540 = sbr.rel (%p606_p4) target bundleno = 141 (0x8d), region = 104 }
  0x6f   : > { %v1419_v4 = vmov %v219_v3  ;;  %v1004_v5 = vmov (!%p606_p4), %v219_v3  }
  0x75 LB: >> { %s227_s12 = ssub.s32 %s986_s15, %s1010_s24  ;;  %s609_s8 = sshll.u32 %s1010_s24, 3  ;;  %s1010_s24 = sphi %s1250_s24, %s223_s24   ;;  %v1006_v5 = vphi %v1004_v5, %v1005_v5  }
  0x76   : >> { %s1258_s20 = sshll.u32 %s227_s12, 3  ;;  %s1261_s4 = scalar_lea.vmem [#allocation2], %s609_s8 }
  0x77   : >> { %s608_s3 = sadd.s32 4294967295, %s1258_s20  ;;  %v611_v6 = vld [vmem:[%s1261_s4 + $0x1] ss:$0 sm:$0xff]  ;;  %s612_s0 = sadd.s32 4294967294, %s1258_s20  ;;  %v615_v7 = vld [vmem:[%s1261_s4 + $0x2] ss:$0 sm:$0xff] }
  0x78   : >> { %s230_s26 = scalar_lea.vmem %s1231_s29, %s608_s3 [#allocation5]  ;;  %s243_s5 = scalar_lea.vmem %s1231_s29, %s612_s0 [#allocation5]  ;;  %v619_v10 = vld [vmem:[%s1261_s4 + $0x3] ss:$0 sm:$0xff]  ;;  %v623_v15 = vld [vmem:[%s1261_s4 + $0x4] ss:$0 sm:$0xff]  ;;  %v627_v19 = vld [vmem:[%s1261_s4 + $0x5] ss:$0 sm:$0xff] }
  0x79   : >> { %v231_v8 = vld [vmem:[%s230_s26] sm:$0xff]  ;;  %s616_s7 = sadd.s32 4294967293, %s1258_s20  ;;  %s620_s30 = sadd.s32 4294967292, %s1258_s20  ;;  %v639_v31 = vld [vmem:[%s1261_s4 + $0x8] ss:$0 sm:$0xff] }
  0x7a   : >> { %v244_v9 = vld [vmem:[%s243_s5] sm:$0xff]  ;;  %v240_v11 = vmul.f32 %v611_v6, %v231_v8  ;;  %s255_s6 = scalar_lea.vmem %s1231_s29, %s616_s7 [#allocation5]  ;;  %s267_s12 = scalar_lea.vmem %s1231_s29, %s620_s30 [#allocation5] }
  0x7b   : >> { %v252_v12 = vmul.f32 %v615_v7, %v244_v9  ;;  %v256_v13 = vld [vmem:[%s255_s6] sm:$0xff]  ;;  %s624_s8 = sadd.s32 4294967291, %s1258_s20  ;;  %s628_s3 = sadd.s32 4294967290, %s1258_s20 }
  0x7c   : >> { %v268_v14 = vld [vmem:[%s267_s12] sm:$0xff]  ;;  %v241_v16 = vadd.f32 %v1006_v5, %v240_v11  ;;  %v264_v17 = vmul.f32 %v619_v10, %v256_v13  ;;  %s279_s0 = scalar_lea.vmem %s1231_s29, %s624_s8 [#allocation5]  ;;  %s291_s26 = scalar_lea.vmem %s1231_s29, %s628_s3 [#allocation5] }
  0x7d   : >> { %v280_v18 = vld [vmem:[%s279_s0] sm:$0xff]  ;;  %s632_s5 = sadd.s32 4294967289, %s1258_s20  ;;  %s636_s17 = sadd.s32 4294967288, %s1258_s20  ;;  %v276_v21 = vmul.f32 %v623_v15, %v268_v14 }
  0x7e   : >> { %v253_v20 = vadd.f32 %v252_v12, %v241_v16  ;;  %s303_s7 = scalar_lea.vmem %s1231_s29, %s632_s5 [#allocation5]  ;;  %v292_v22 = vld [vmem:[%s291_s26] sm:$0xff]  ;;  %v288_v25 = vmul.f32 %v627_v19, %v280_v18  ;;  %s315_s30 = scalar_lea.vmem %s1231_s29, %s636_s17 [#allocation5] }
  0x7f   : >> { %v631_v23 = vld [vmem:[%s1261_s4 + $0x6] ss:$0 sm:$0xff]  ;;  %v635_v27 = vld [vmem:[%s1261_s4 + $0x7] ss:$0 sm:$0xff]  ;;  %s223_s24 = sadd.s32 1, %s1010_s24  }
  0x80   : >> { %v265_v24 = vadd.f32 %v264_v17, %v253_v20  ;;  %v304_v26 = vld [vmem:[%s303_s7] sm:$0xff]  ;;  %v300_v29 = vmul.f32 %v631_v23, %v292_v22  ;;  %p222_p7 = scmp.ge.s32.totalorder %s223_s24, %s986_s15 }
  0x81   : >> { %v316_v30 = vld [vmem:[%s315_s30] sm:$0xff]  ;;  %v312_v33 = vmul.f32 %v635_v27, %v304_v26 }
  0x82   : >> { %v277_v28 = vadd.f32 %v276_v21, %v265_v24  ;;  %v324_v35 = vmul.f32 %v639_v31, %v316_v30 }
  0x84   : >> { %v289_v32 = vadd.f32 %v288_v25, %v277_v28 }
  0x86   : >> { %v301_v34 = vadd.f32 %v300_v29, %v289_v32  ;;  %225 = sbr.rel (!%p222_p7) target bundleno = 117 (0x75), region = 110 }
  0x88   : >> { %v313_v36 = vadd.f32 %v312_v33, %v301_v34 }
  0x8a   : >> { %v325_v37 = vadd.f32 %v324_v35, %v313_v36  }
  0x8c   : >> { %v1005_v5 = vmov %v325_v37   ;;  %v1420_v4 = vmov (%p222_p7), %v325_v37 }
  0x8d PF: > { %v326_v38 = vld [vmem:[%s1231_s29] sm:$0xff]  ;;  %v327_v39 = vlaneseq  ;;  %s1296_s17 = scalar_lea.vmem [#allocation2], %s604_s22  ;;  %s662_s29 = sshll.u32 %s990_s16, 1  ;;  %vm407_vm1 = vcmask 261120   ;;  %v1014_v4 = vphi %v1419_v4, %v1420_v4  }
  0x8e   : > { %v330_v40 = vrot.slane %v326_v38, 7  ;;  %v642_v42 = vld [vmem:[%s1296_s17 + $0x1] ss:$0 sm:$0xff]  ;;  %v645_v46 = vld [vmem:[%s1296_s17 + $0x2] ss:$0 sm:$0xff]  ;;  %s422_s22 = sadd.s32 %s986_s15, %s662_s29  ;;  %s426_s20 = sshll.u32 %s209_s23, 4  ;;  %s1321_s20 = int_to_ptr.vmem [resolvable:$true] %s426_s20 }
  0x8f   : > { %v328_v41 = vshrl.u32 %v327_v39, 7  ;;  %v648_v51 = vld [vmem:[%s1296_s17 + $0x3] ss:$0 sm:$0xff]  ;;  %v651_v56 = vld [vmem:[%s1296_s17 + $0x4] ss:$0 sm:$0xff]  ;;  %s663_s24 = sshll.u32 %s422_s22, 7 }
  0x90   : > { %v654_v61 = vld [vmem:[%s1296_s17 + $0x5] ss:$0 sm:$0xff]  ;;  %v657_v2 = vld [vmem:[%s1296_s17 + $0x6] ss:$0 sm:$0xff]  ;;  %v660_v7 = vld [vmem:[%s1296_s17 + $0x7] ss:$0 sm:$0xff]  ;;  %s1319_s6 = scalar_lea.hbm %s1387_s2, %s663_s24 }
  0x91   : > { %vm329_vm0 = vcmp.gt.s32.totalorder %v328_v41, 0  ;;  %s1421_s15 = sand.u32 1, %s966_s10   ;;  %s864_s8 = scalar_lea.vmem %s1321_s20, 128 }
  0x92   : > { %v331_v43 = vsel %vm329_vm0, %v330_v40, 0.0  ;;  %s410_s12 = scalar_lea.sflag [#allocation4], %s1421_s15  ;;  %p865_p9 = scmp.ne.s32.totalorder %s1321_s20, %s864_s8 }
  0x93   : > { %v339_v44 = vmul.f32 %v642_v42, %v331_v43  ;;  %v341_v45 = vrot.slane %v331_v43, 7  ;;  %p1422_p11 = scmp.ne.s32.totalorder %s1404_s25, 0  ;;  %s1020_s3 = smov [#allocation7]  }
  0x94   : > { %s868_s0 = sshll.u32 %s1020_s3, 4  ;;  %s869_s0 = int_to_ptr.vmem [resolvable:$false] %s868_s0 }
  0x95   : > { %v340_v47 = vadd.f32 %v1014_v4, %v339_v44  ;;  %v342_v48 = vsel %vm329_vm0, %v341_v45, 0.0  ;;  %p866_p13 = pnand %p865_p9, %p1422_p11  ;;  %s870_s26 = scalar_lea.vmem %s869_s0, 256 }
  0x96   : > { %v350_v49 = vmul.f32 %v645_v46, %v342_v48  ;;  %v352_v50 = vrot.slane %v342_v48, 7  ;;  %p871_p2 = scmp.lt.s32.totalorder %s1321_s20, %s869_s0  ;;  %p872_p5 = scmp.lt.s32.totalorder %s870_s26, %s864_s8 }
  0x97   : > { %p867_p0 = pneg %p866_p13 }
  0x98   : > { %v351_v52 = vadd.f32 %v350_v49, %v340_v47  ;;  %v353_v53 = vsel %vm329_vm0, %v352_v50, 0.0  ;;  %p873_p8 = por %p872_p5, %p871_p2 }
  0x99   : > { %v361_v54 = vmul.f32 %v648_v51, %v353_v53  ;;  %v363_v55 = vrot.slane %v353_v53, 7 }
  0x9a   : > { %p874_p12 = pnand %p873_p8, %p867_p0 }
  0x9b   : > { %v362_v57 = vadd.f32 %v361_v54, %v351_v52  ;;  %v364_v58 = vsel %vm329_vm0, %v363_v55, 0.0 }
  0x9c   : > { %v372_v59 = vmul.f32 %v651_v56, %v364_v58  ;;  %v374_v60 = vrot.slane %v364_v58, 7 }
  0x9e   : > { %v373_v62 = vadd.f32 %v372_v59, %v362_v57  ;;  %v375_v63 = vsel %vm329_vm0, %v374_v60, 0.0 }
  0x9f   : > { %v383_v0 = vmul.f32 %v654_v61, %v375_v63  ;;  %v385_v1 = vrot.slane %v375_v63, 7 }
  0xa1   : > { %v384_v3 = vadd.f32 %v383_v0, %v373_v62  ;;  %v386_v4 = vsel %vm329_vm0, %v385_v1, 0.0 }
  0xa2   : > { %v394_v5 = vmul.f32 %v657_v2, %v386_v4  ;;  %v396_v6 = vrot.slane %v386_v4, 7 }
  0xa4   : > { %v395_v8 = vadd.f32 %v394_v5, %v384_v3  ;;  %v397_v9 = vsel %vm329_vm0, %v396_v6, 0.0 }
  0xa5   : > { %v405_v10 = vmul.f32 %v660_v7, %v397_v9 }
  0xa7   : > { %v406_v11 = vadd.f32 %v405_v10, %v395_v8 }
  0xa9   : > { %408 = vst.msk [vmem:[%s209_s23] sm:$0xff] %vm407_vm1, %v406_v11 }
  0xaa   : > { %877 = shalt.err (!%p874_p12)
}
  0xab   : > { %s878_s27 = scalar_lea.hbm %s1319_s6, 128  ;;  %s882_s7 = scalar_lea.hbm %s1387_s2, 512 }
  0xac   : > { %p879_p1 = scmp.ne.s32.totalorder %s1319_s6, %s878_s27  ;;  %p883_p3 = scmp.lt.u32.totalorder %s1319_s6, %s1387_s2 }
  0xad   : > { %p884_p4 = scmp.lt.u32.totalorder %s882_s7, %s878_s27  ;;  %p886_p9 = scmp.lt.u32.totalorder %s878_s27, %s1319_s6 }
  0xae   : > { %p880_p6 = pnand %p879_p1, %p1422_p11 }
  0xaf   : > { %p885_p7 = por %p884_p4, %p883_p3 }
  0xb0   : > { %p881_p10 = pneg %p880_p6 }
  0xb1   : > { %p887_p13 = por %p886_p9, %p885_p7 }
  0xb3   : > { %p888_p0 = pnand %p887_p13, %p881_p10 }
  0xb5   : > { %891 = shalt.err (!%p888_p0)
}
  0xb6   : > { %673 = dma.vmem_to_hbm [thread:$0]  (%p1422_p11), %s1321_s20, 128, %s1319_s6, %s410_s12  }
  0xb7 PF: > { %s1423_s29 = sld [smem:[#allocation12_spill]]  ;;  %p690_p2 = scmp.ge.s32.totalorder %s1002_s19, 2 }
  0xb8   : > { %s438_s22 = sand.u32 1, %s962_s9  }
  0xb9   : > { %s439_s24 = scalar_lea.sflag [#allocation4], %s438_s22 }
  0xbd   : > { %p1424_p5 = scmp.ne.s32.totalorder %s1423_s29, 0 }
  0xbf   : > { %p684_p8 = pnand %p690_p2, %p1424_p5 }
  0xc1   : > { %957 = dma.done.wait (!%p684_p8), %s439_s24, 128  }
  0xc2   : > { %959 = vsyncadd (!%p684_p8), %s439_s24, 4294967168  ;;  %s19_s19 = sadd.s32 1, %s1002_s19   ;;  %s1425_s15 = sld [smem:[#allocation11_spill]] }
  0xc3   : > { %p16_p12 = scmp.ge.s32.totalorder %s19_s19, 6   ;;  %s1426_s17 = sld [smem:[#allocation13_spill]] }
  0xc4   : > { %s1427_s25 = sld [smem:[#allocation14_spill]]  ;;  %s1428_s9 = smov %s966_s10 }
  0xc5   : > { %s1429_s10 = smov %s970_s11  ;;  %s1430_s11 = smov %s1176_s28 }
  0xc6   : > { %s1431_s12 = smov %s978_s13  ;;  %s1432_s13 = smov %s982_s14 }
  0xc7   : > { %s1433_s14 = smov %s1171_s21  ;;  %s1434_s16 = smov %s998_s18 }
  0xc8   :  { %18 = sbr.rel (!%p16_p12) target bundleno = 12 (0xc), region = 121 }
  0xca   : > { %s1435_s18 = smov %s1427_s25 }
  0xcf   :  { %444 = vsyncpa [#allocation3], 1 }
  0xd0   :  { %446 = vsyncpa [#allocation3 + $0x1], 1 }
  0xd1   :  { %447 = vsyncpa [#allocation6], 1 }
  0xd2   :  { %449 = vsyncpa [#allocation6 + $0x1], 1 }
  0xd3   :  { %450 = vsyncpa [#allocation4], 1 }
  0xd4   :  { %452 = vsyncpa [#allocation4 + $0x1], 1 }

</bundles_post_ra>
